<compile_context>
chip_gen: v7x
topology: tpu7x:2x2x1
jax: 0.10.0
libtpu: 0.0.40
codegen_flags: <defaults>
</compile_context>

<pallas_src>
import math

import jax
import jax.numpy as jnp
from jax.experimental import pallas as pl
from jax.experimental.pallas import tpu as pltpu

LANES = 128                              # vreg lane width
TARGET_BLOCK_BYTES = 4 * 1024 * 1024     # ~4 MiB x-block: HBM-roofline plateau
VMEM_LIMIT_BYTES = 32 * 1024 * 1024      # safe on v5e/v6e (128 MiB) and v7x (64 MiB)


def affine_kernel(x_ref, scale_ref, shift_ref, o_ref):
    # Pure VPU elementwise: (tb, Fp) * (1, Fp) + (1, Fp) -> (tb, Fp).
    # Params stay (1, Fp): the kernel is HBM-bound, the sublane broadcast is
    # not on the critical path.
    o_ref[...] = x_ref[...] * scale_ref[...] + shift_ref[...]


def _pick_batch_tile(Bp: int, row_bytes: int, sub: int) -> int:
    """Sublane-aligned batch tile with a ~4 MiB block budget and, when
    possible, >= 2 grid steps (so v7x's two TensorCores both stream via the
    "parallel" grid axis)."""
    tb = max(1, TARGET_BLOCK_BYTES // row_bytes)
    if Bp >= 2 * sub:
        tb = min(tb, Bp // 2)                # guarantee at least 2 grid steps
    tb = min(tb, Bp)
    if Bp >= sub:
        tb = max(sub, (tb // sub) * sub)     # sublane-aligned block rows
    else:
        tb = Bp                              # full-dim block (allowed by tiling rule)
    return tb


def _affine_2d(x2: jax.Array, scale_row: jax.Array, shift_row: jax.Array) -> jax.Array:
    """Pallas affine on a 2-D (Bp, Fp) array; scale_row/shift_row are (1, Fp)."""
    Bp, Fp = x2.shape
    dtype = x2.dtype
    itemsize = jnp.dtype(dtype).itemsize
    sub = {4: 8, 2: 16, 1: 32}.get(itemsize, 8)

    tb = _pick_batch_tile(Bp, Fp * itemsize, sub)
    n_blocks = pl.cdiv(Bp, tb)   # ragged final block: no host-side pad/slice copies

    cost = pl.CostEstimate(
        flops=2 * Bp * Fp,
        transcendentals=0,
        bytes_accessed=(2 * Bp * Fp + 2 * Fp) * itemsize,
    )

    return pl.pallas_call(
        affine_kernel,
        out_shape=jax.ShapeDtypeStruct((Bp, Fp), dtype),
        grid_spec=pltpu.PrefetchScalarGridSpec(
            num_scalar_prefetch=0,
            grid=(n_blocks,),
            in_specs=[
                pl.BlockSpec((tb, Fp), lambda i: (i, 0)),
                pl.BlockSpec((1, Fp), lambda i: (0, 0)),   # constant block: no re-DMA
                pl.BlockSpec((1, Fp), lambda i: (0, 0)),
            ],
            out_specs=pl.BlockSpec((tb, Fp), lambda i: (i, 0)),
        ),
        compiler_params=pltpu.CompilerParams(
            dimension_semantics=("parallel",),             # megacore-shardable on v7x
            vmem_limit_bytes=VMEM_LIMIT_BYTES,
        ),
        cost_estimate=cost,
    )(x2, scale_row, shift_row)


def affine(x: jax.Array, shift: jax.Array, scale: jax.Array) -> jax.Array:
    """Element-wise affine y = x * scale + shift.

    x:            (..., F)  (leading dims are flattened internally)
    shift, scale: broadcastable to (F,), applied per-feature.
    """
    orig_shape = x.shape
    F = orig_shape[-1]
    B = math.prod(orig_shape[:-1]) if len(orig_shape) > 1 else 1
    dtype = x.dtype
    # NOTE: params are cast to x.dtype. PyTorch type-promotion (bf16 x with
    # f32 params -> f32 out) is intentionally not reproduced here.
    shift1 = jnp.broadcast_to(jnp.asarray(shift, dtype), (F,))
    scale1 = jnp.broadcast_to(jnp.asarray(scale, dtype), (F,))
    x2 = x.reshape(B, F)

    # ---- Lane-dense packing ------------------------------------------------
    # Fold k batch rows into the feature axis so Fp = k*F = lcm(F, 128) is an
    # exact multiple of 128 (unmasked full-lane stores). The per-feature
    # broadcast is periodic in F, so tiling scale/shift k times is identical.
    if F % LANES == 0:
        k = 1
    else:
        k = LANES // math.gcd(F, LANES)

    B_bulk = (B // k) * k
    if B_bulk == 0:
        # Fewer rows than the packing factor: tiny problem, run unpacked.
        k, B_bulk = 1, B

    Fp = F * k
    scale_p = jnp.tile(scale1, k).reshape(1, Fp)
    shift_p = jnp.tile(shift1, k).reshape(1, Fp)

    x_bulk = x2 if B_bulk == B else x2[:B_bulk]
    y_bulk = _affine_2d(x_bulk.reshape(B_bulk // k, Fp), scale_p, shift_p)
    y_bulk = y_bulk.reshape(B_bulk, F)

    tail = B - B_bulk
    if tail:
        # <= k-1 leftover rows: plain XLA keeps the bulk path 100% lane-dense
        # without padded copies of x or sliced copies of y.
        y_tail = x2[B_bulk:] * scale1 + shift1
        y2 = jnp.concatenate([y_bulk, y_tail], axis=0)
    else:
        y2 = y_bulk

    return y2.reshape(orig_shape)


if __name__ == "__main__":
    key = jax.random.PRNGKey(0)
    kx, kshift, kscale = jax.random.split(key, 3)

    # Small shapes consistent with the module: batch=8, hidden=32.
    B, F = 8, 32
    x = jax.random.normal(kx, (B, F), dtype=jnp.float32)
    shift = jax.random.normal(kshift, (F,), dtype=jnp.float32)
    scale = jax.random.normal(kscale, (F,), dtype=jnp.float32)

    y = affine(x, shift, scale)
    jax.block_until_ready(y)
    y_ref = x * scale + shift
    assert y.shape == x.shape and y.dtype == x.dtype
    assert jnp.allclose(y, y_ref, atol=1e-6, rtol=1e-6)

    # Ragged-final-block path (Bp % tb != 0): no host pad / output slice.
    x2 = jax.random.normal(kx, (1000, F), dtype=jnp.float32)
    y2 = affine(x2, shift, scale)
    jax.block_until_ready(y2)
    assert jnp.allclose(y2, x2 * scale + shift, atol=1e-6, rtol=1e-6)

    # Bulk + tail split (B % k != 0) and arbitrary leading dims.
    x3 = jax.random.normal(kx, (3, 7, F), dtype=jnp.float32)   # 21 rows, k=4 -> tail=1
    y3 = affine(x3, shift, scale)
    jax.block_until_ready(y3)
    assert jnp.allclose(y3, x3 * scale + shift, atol=1e-6, rtol=1e-6)

    # Already lane-aligned feature width (F % 128 == 0): no packing, multi-step grid.
    F4 = 256
    x4 = jax.random.normal(kx, (64, F4), dtype=jnp.float32)
    shift4 = jax.random.normal(kshift, (F4,), dtype=jnp.float32)
    scale4 = jax.random.normal(kscale, (F4,), dtype=jnp.float32)
    y4 = affine(x4, shift4, scale4)
    jax.block_until_ready(y4)
    assert jnp.allclose(y4, x4 * scale4 + shift4, atol=1e-6, rtol=1e-6)

    print("KERNEL_OK")
</pallas_src>

<mosaic_0001>
module attributes {stable_mosaic.version = 11 : i64} {
  func.func @affine_kernel(%arg0: i32, %arg1: memref<2x128xf32, #tpu.memory_space<vmem>>, %arg2: memref<1x128xf32, #tpu.memory_space<vmem>>, %arg3: memref<1x128xf32, #tpu.memory_space<vmem>>, %arg4: memref<2x128xf32, #tpu.memory_space<vmem>>) attributes {dimension_semantics = [#tpu.dimension_semantics<parallel>], iteration_bounds = array<i64: 1>, scalar_prefetch = 0 : i64, scratch_operands = 0 : i64, tpu.core_type = #tpu.core_type<tc>, window_params = [{transform_indices = @transform_0, window_bounds = array<i64: 2, 128>}, {pipeline_mode = #tpu.pipeline_mode<synchronous>, transform_indices = @transform_1, window_bounds = array<i64: 1, 128>}, {pipeline_mode = #tpu.pipeline_mode<synchronous>, transform_indices = @transform_2, window_bounds = array<i64: 1, 128>}, {transform_indices = @transform_3, window_bounds = array<i64: 2, 128>}]} {
    %c0 = arith.constant 0 : index
    %c0_0 = arith.constant 0 : index
    %0 = vector.load %arg1[%c0, %c0_0] : memref<2x128xf32, #tpu.memory_space<vmem>>, vector<2x128xf32>
    %c0_1 = arith.constant 0 : index
    %c0_2 = arith.constant 0 : index
    %1 = vector.load %arg2[%c0_1, %c0_2] : memref<1x128xf32, #tpu.memory_space<vmem>>, vector<1x128xf32>
    %2 = vector.broadcast %1 : vector<1x128xf32> to vector<2x128xf32>
    %3 = arith.mulf %0, %2 : vector<2x128xf32>
    %c0_3 = arith.constant 0 : index
    %c0_4 = arith.constant 0 : index
    %4 = vector.load %arg3[%c0_3, %c0_4] : memref<1x128xf32, #tpu.memory_space<vmem>>, vector<1x128xf32>
    %5 = vector.broadcast %4 : vector<1x128xf32> to vector<2x128xf32>
    %6 = arith.addf %3, %5 : vector<2x128xf32>
    %c0_5 = arith.constant 0 : index
    %c0_6 = arith.constant 0 : index
    %7 = vector.load %arg4[%c0_5, %c0_6] : memref<2x128xf32, #tpu.memory_space<vmem>>, vector<2x128xf32>
    tpu.vector_store %arg4[%c0_5, %c0_6], %6 {strides = array<i32>} : memref<2x128xf32, #tpu.memory_space<vmem>>, vector<2x128xf32>,
    return
  }
  func.func @transform_0(%arg0: i32) -> (i32, i32) {
    %c0_i32 = arith.constant 0 : i32
    %c0_i32_0 = arith.constant 0 : i32
    return %arg0, %c0_i32 : i32, i32
  }
  func.func @transform_1(%arg0: i32) -> (i32, i32) {
    %c0_i32 = arith.constant 0 : i32
    %c0_i32_0 = arith.constant 0 : i32
    %c0_i32_1 = arith.constant 0 : i32
    return %c0_i32, %c0_i32_0 : i32, i32
  }
  func.func @transform_2(%arg0: i32) -> (i32, i32) {
    %c0_i32 = arith.constant 0 : i32
    %c0_i32_0 = arith.constant 0 : i32
    %c0_i32_1 = arith.constant 0 : i32
    return %c0_i32, %c0_i32_0 : i32, i32
  }
  func.func @transform_3(%arg0: i32) -> (i32, i32) {
    %c0_i32 = arith.constant 0 : i32
    %c0_i32_0 = arith.constant 0 : i32
    return %arg0, %c0_i32 : i32, i32
  }
}

</mosaic_0001>

<bundles_post_ra>
// kernel: tpu_custom_call.1
= control target key start
LH: loop header
LB: loop body
LE: loop exit
PB: predicated region body
PF: predicated region fallthrough
CT: control target
= control target key end

     0   :  { %8 = vsyncpa [#allocation3], 0  ;;  %s164_s0 = inlined_call_operand.hbm [shape: f32[2,128], index: 0, kind: input, shape index: {}]   ;;  %s165_s1 = inlined_call_operand.vmem [shape: f32[1,128], index: 1, kind: input, shape index: {}]   ;;  %s166_s2 = inlined_call_operand.vmem [shape: f32[1,128], index: 2, kind: input, shape index: {}]   ;;  %s167_s3 = inlined_call_operand.hbm [shape: f32[2,128], index: 3, kind: output, shape index: {}]  }
   0x1   :  { %9 = vsyncpa [#allocation4], 0  ;;  %s112_s12 = smov [#allocation2]   ;;  %s64_s16 = scalar_lea.hbm %s164_s0, 32 }
   0x2   :  { %s16_s13 = sshll.u32 %s112_s12, 4  ;;  %p65_p0 = scmp.ne.s32.totalorder %s164_s0, %s64_s16  ;;  %s17_s13 = int_to_ptr.vmem [resolvable:$true] %s16_s13 }
   0x3   :  { %p68_p1 = scmp.lt.u32.totalorder %s64_s16, %s164_s0 }
   0x5   :  { %p70_p2 = pnand %p68_p1, %p65_p0 }
   0x7   :  { %73 = shalt.err (!%p70_p2)
}
   0x8   :  { %s74_s21 = scalar_lea.vmem %s17_s13, 32  ;;  %p79_p4 = scmp.lt.s32.totalorder %s17_s13, %s17_s13 }
   0x9   :  { %p75_p3 = scmp.ne.s32.totalorder %s17_s13, %s74_s21  ;;  %p80_p5 = scmp.lt.s32.totalorder %s74_s21, %s74_s21 }
   0xb   :  { %p81_p6 = por %p80_p5, %p79_p4 }
   0xd   :  { %p82_p7 = pnand %p81_p6, %p75_p3 }
   0xf   :  { %85 = shalt.err (!%p82_p7)
}
  0x10   :  { %19 = dma.hbm_to_vmem [thread:$0]  %s164_s0, 32, %s17_s13, [#allocation3]  }
  0x11   :  { %108 = dma.done.wait [#allocation3], 32  }
  0x12   :  { %109 = vsyncadd [#allocation3], 4294967264  ;;  %s113_s24 = smov [#allocation5]   ;;  %v27_v0 = vld [vmem:[#allocation2] sm:$0x3] }
  0x13   :  { %s51_s25 = sshll.u32 %s113_s24, 4  ;;  %v60_v1 = vld [vmem:[%s165_s1] ss:$0 sm:$0xff]  ;;  %s52_s25 = int_to_ptr.vmem [resolvable:$true] %s51_s25 }
  0x14   :  { %v61_v2 = vld [vmem:[%s166_s2] ss:$0 sm:$0xff]  ;;  %v35_v3 = vmul.f32 %v60_v1, %v27_v0  ;;  %s86_s30 = scalar_lea.vmem %s52_s25, 32  ;;  %p91_p9 = scmp.lt.s32.totalorder %s52_s25, %s52_s25 }
  0x15   :  { %p87_p8 = scmp.ne.s32.totalorder %s52_s25, %s86_s30  ;;  %p92_p10 = scmp.lt.s32.totalorder %s86_s30, %s86_s30 }
  0x16   :  { %v43_v4 = vadd.f32 %v61_v2, %v35_v3 }
  0x17   :  { %p93_p11 = por %p92_p10, %p91_p9 }
  0x18   :  { %44 = vst [vmem:[#allocation5] sm:$0x3] %v43_v4 }
  0x19   :  { %p94_p12 = pnand %p93_p11, %p87_p8 }
  0x1b   :  { %97 = shalt.err (!%p94_p12)
}
  0x1c   :  { %s98_s5 = scalar_lea.hbm %s167_s3, 32 }
  0x1d   :  { %p99_p13 = scmp.ne.s32.totalorder %s167_s3, %s98_s5  ;;  %p102_p0 = scmp.lt.u32.totalorder %s98_s5, %s167_s3 }
  0x1f   :  { %p104_p1 = pnand %p102_p0, %p99_p13 }
  0x21   :  { %107 = shalt.err (!%p104_p1)
}
  0x22   :  { %54 = dma.vmem_to_hbm [thread:$0]  %s52_s25, 32, %s167_s3, [#allocation4]  }
  0x23   :  { %110 = dma.done.wait [#allocation4], 32  }
  0x24   :  { %111 = vsyncadd [#allocation4], 4294967264 }
  0x25   :  { %58 = vsyncpa [#allocation3], 1 }
  0x26   :  { %59 = vsyncpa [#allocation4], 1 }

</bundles_post_ra>
